<compile_context>
chip_gen: v5e
topology: v5e:2x2
jax: 0.10.0
libtpu: 0.0.40
codegen_flags: <defaults>
</compile_context>

<pallas_src>
import functools
import math

import numpy as np
import jax
import jax.numpy as jnp
from jax.experimental import pallas as pl
from jax.experimental.pallas import tpu as pltpu


def ntn_kernel(e1_ref, e2_ref, w_ref, r_ref, q_ref, wb_ref, bias_ref, out_ref):
    """out = tanh(e1 W[:,:,t] e2^T + [e1;e2] Wb + b) for all t, one batch tile.

    e1_ref, e2_ref : (TB, D)      f32   batch tile of embeddings
    w_ref          : (D, D*T)     bf16  W_flat[i, j*T+t] = W[i, j, t]
    r_ref          : (D, D*T)     bf16  constant, R[j, j*T+t] = 1   (e2 expansion)
    q_ref          : (D*T, Tp)    bf16  constant, Q[j*T+t, t] = 1   (reduce over j)
    wb_ref         : (2*D, Tp)    bf16  weight_matrix_block, T zero-padded to Tp lanes
    bias_ref       : (1, Tp)      f32
    out_ref        : (TB, Tp)     f32
    """
    # bf16 operands for the MXU (bf16-native on v5e/v6e/v7x); accumulate in f32.
    e1 = e1_ref[...].astype(jnp.bfloat16)                                  # (TB, D)
    e2 = e2_ref[...].astype(jnp.bfloat16)                                  # (TB, D)

    # M[b, j*T+t] = sum_i e1[b,i] * W[i,j,t]
    m = jnp.dot(e1, w_ref[...], preferred_element_type=jnp.float32)       # (TB, D*T) f32
    # E2X[b, j*T+t] = e2[b, j]   (0/1 expansion matmul; exact under f32 accumulation)
    e2x = jnp.dot(e2, r_ref[...], preferred_element_type=jnp.float32)     # (TB, D*T) f32

    # Hadamard in f32 on the VPU; cast the product once for the MXU reduction matmul.
    h = (m * e2x).astype(jnp.bfloat16)                                     # (TB, D*T)

    # matrix_scores[b, t] = sum_j H[b, j*T+t]  via a 0/1 reduction matmul.
    matrix_scores = jnp.dot(h, q_ref[...], preferred_element_type=jnp.float32)   # (TB, Tp)

    # Block term: a single dot on the lane-concatenated [e1 ; e2].
    cat = jnp.concatenate([e1, e2], axis=-1)                               # (TB, 2D) bf16
    mat_blo_scores = jnp.dot(cat, wb_ref[...], preferred_element_type=jnp.float32)  # (TB, Tp)

    out_ref[...] = jnp.tanh(matrix_scores + mat_blo_scores + bias_ref[...])


@functools.lru_cache(maxsize=None)
def _ntn_constants(dim, tensors, t_pad):
    """Constant 0/1 expansion / reduction matrices, built once per (D, T, Tp)."""
    dt = dim * tensors
    cols = np.arange(dt)
    r = np.zeros((dim, dt), np.float32)
    r[cols // tensors, cols] = 1.0            # (e2 @ R)[b, j*T+t] = e2[b, j]
    q = np.zeros((dt, t_pad), np.float32)
    q[cols, cols % tensors] = 1.0             # (H @ Q)[b, t]      = sum_j H[b, j*T+t]
    return jnp.asarray(r, jnp.bfloat16), jnp.asarray(q, jnp.bfloat16)


def neural_tensor_forward(emb_1, emb_2, weight_matrix, weight_matrix_block, bias,
                          *, block_batch=512):
    """Pallas wrapper.

    emb_1, emb_2        : (B, D)      f32
    weight_matrix       : (D, D, T)   f32
    weight_matrix_block : (2*D, T)    f32
    bias                : (T,)        f32
    returns             : (B, T)      f32
    """
    B, D = emb_1.shape
    T = weight_matrix.shape[-1]
    t_pad = ((T + 127) // 128) * 128          # lane-dense output -> full-width stores

    # bf16 matmul operands (f32 accumulation happens in-kernel). Free reshape of W:
    # W_flat[i, j*T + t] = W[i, j, t].
    w_flat = weight_matrix.reshape(D, D * T).astype(jnp.bfloat16)
    wb = jnp.pad(weight_matrix_block.astype(jnp.bfloat16), ((0, 0), (0, t_pad - T)))
    bias2d = jnp.pad(bias.astype(jnp.float32).reshape(1, T), ((0, 0), (0, t_pad - T)))
    r_mat, q_mat = _ntn_constants(D, T, t_pad)

    # Batch tiling: >= 2 grid steps whenever possible (v7x has 2 TensorCores and
    # "parallel" only helps with >= 2 steps), multiple of 8 sublanes, capped at
    # block_batch (multiple of 256 to fill the MXU M dimension).
    if B <= 8:
        tb = B
    else:
        half = -(-B // 2)                     # cdiv(B, 2)
        half = -(-half // 8) * 8              # round up to a multiple of 8
        tb = min(block_batch, half)
    grid = (pl.cdiv(B, tb),)

    out = pl.pallas_call(
        ntn_kernel,
        out_shape=jax.ShapeDtypeStruct((B, t_pad), jnp.float32),
        grid=grid,
        in_specs=[
            pl.BlockSpec((tb, D), lambda i: (i, 0)),          # e1 batch tile
            pl.BlockSpec((tb, D), lambda i: (i, 0)),          # e2 batch tile
            pl.BlockSpec((D, D * T), lambda i: (0, 0)),       # W flat    (VMEM-resident)
            pl.BlockSpec((D, D * T), lambda i: (0, 0)),       # R expand  (resident)
            pl.BlockSpec((D * T, t_pad), lambda i: (0, 0)),   # Q reduce  (resident)
            pl.BlockSpec((2 * D, t_pad), lambda i: (0, 0)),   # Wb        (resident)
            pl.BlockSpec((1, t_pad), lambda i: (0, 0)),       # bias      (resident)
        ],
        out_specs=pl.BlockSpec((tb, t_pad), lambda i: (i, 0)),
        compiler_params=pltpu.CompilerParams(
            dimension_semantics=("parallel",),                 # shards batch on v7x's 2 TCs
            vmem_limit_bytes=32 * 1024 * 1024,                 # headroom above v5e's 16 MiB default
        ),
    )(emb_1, emb_2, w_flat, r_mat, q_mat, wb, bias2d)
    return out[:, :T]


def reference(emb_1, emb_2, W, Wb, bias):
    """Pure-JAX f32 transcription of the PyTorch forward (semantic check)."""
    D, _, T = W.shape
    scores = (emb_1 @ W.reshape(D, D * T)).reshape(-1, D, T)
    scores = jnp.transpose(scores, (0, 2, 1))                       # (B, T, D)
    matrix_scores = jnp.einsum("btd,bd->bt", scores, emb_2)         # (B, T)
    mat_blo_scores = jnp.concatenate([emb_1, emb_2], axis=1) @ Wb   # (B, T)
    return jnp.tanh(matrix_scores + mat_blo_scores + bias)


def reference_bf16(emb_1, emb_2, W, Wb, bias):
    """Same math with the kernel's bf16 operand/intermediate quantization (tight check)."""
    bf, f32 = jnp.bfloat16, jnp.float32
    e1 = emb_1.astype(bf).astype(f32)
    e2 = emb_2.astype(bf).astype(f32)
    Wq = W.astype(bf).astype(f32)
    Wbq = Wb.astype(bf).astype(f32)
    m = jnp.einsum("bi,ijt->bjt", e1, Wq)                           # f32 accumulation
    h = (m * e2[:, :, None]).astype(bf).astype(f32)                 # matches in-kernel H cast
    matrix_scores = h.sum(axis=1)
    mat_blo_scores = jnp.concatenate([e1, e2], axis=1) @ Wbq
    return jnp.tanh(matrix_scores + mat_blo_scores + bias)


if __name__ == "__main__":
    dim, tensors = 32, 16

    key = jax.random.PRNGKey(0)
    k_w, k_wb, k_b, k_e1, k_e2, k_e3, k_e4 = jax.random.split(key, 7)

    # Deterministic glorot-style (uniform) init, matching the __init__ shapes.
    bound_w = math.sqrt(6.0 / (dim + tensors))
    weight_matrix = jax.random.uniform(
        k_w, (dim, dim, tensors), jnp.float32, -bound_w, bound_w)
    bound_b = math.sqrt(6.0 / (2 * dim + tensors))
    weight_matrix_block = jax.random.uniform(
        k_wb, (2 * dim, tensors), jnp.float32, -bound_b, bound_b)
    # Nonzero bias to exercise the bias-add path (module initializes it to zeros).
    bias = 0.1 * jax.random.normal(k_b, (tensors,), jnp.float32)

    def run_and_check(batch, ke1, ke2, label):
        e1 = jax.random.normal(ke1, (batch, dim), jnp.float32)
        e2 = jax.random.normal(ke2, (batch, dim), jnp.float32)
        out = neural_tensor_forward(e1, e2, weight_matrix, weight_matrix_block, bias)
        out = jax.block_until_ready(out)
        assert out.shape == (batch, tensors), out.shape
        # Tight check vs. a reference that applies the same bf16 quantization as the kernel.
        ref_q = reference_bf16(e1, e2, weight_matrix, weight_matrix_block, bias)
        assert jnp.allclose(out, ref_q, atol=5e-3, rtol=5e-3), \
            f"{label}: mismatch vs bf16-quantized reference"
        # Looser check vs. the pure-f32 reference (bf16 MXU operands => ~1e-2 abs error pre-tanh).
        ref = reference(e1, e2, weight_matrix, weight_matrix_block, bias)
        assert jnp.allclose(out, ref, atol=1.5e-1, rtol=1e-1), \
            f"{label}: mismatch vs f32 reference"

    # Small batch: single grid step.
    run_and_check(8, k_e1, k_e2, "batch=8")
    # Larger batch: tb=256, grid=(2,), weights stay VMEM-resident across steps.
    run_and_check(512, k_e3, k_e4, "batch=512")

    print("KERNEL_OK")
</pallas_src>

<mosaic_0001>
module attributes {stable_mosaic.version = 11 : i64} {
  func.func @ntn_kernel(%arg0: i32, %arg1: memref<8x32xf32, #tpu.memory_space<vmem>>, %arg2: memref<8x32xf32, #tpu.memory_space<vmem>>, %arg3: memref<32x512xbf16, #tpu.memory_space<vmem>>, %arg4: memref<32x512xbf16, #tpu.memory_space<vmem>>, %arg5: memref<512x128xbf16, #tpu.memory_space<vmem>>, %arg6: memref<64x128xbf16, #tpu.memory_space<vmem>>, %arg7: memref<1x128xf32, #tpu.memory_space<vmem>>, %arg8: memref<8x128xf32, #tpu.memory_space<vmem>>) attributes {dimension_semantics = [#tpu.dimension_semantics<parallel>], iteration_bounds = array<i64: 1>, scalar_prefetch = 0 : i64, scratch_operands = 0 : i64, tpu.core_type = #tpu.core_type<tc>, window_params = [{transform_indices = @transform_0, window_bounds = array<i64: 8, 32>}, {transform_indices = @transform_1, window_bounds = array<i64: 8, 32>}, {pipeline_mode = #tpu.pipeline_mode<synchronous>, transform_indices = @transform_2, window_bounds = array<i64: 32, 512>}, {pipeline_mode = #tpu.pipeline_mode<synchronous>, transform_indices = @transform_3, window_bounds = array<i64: 32, 512>}, {pipeline_mode = #tpu.pipeline_mode<synchronous>, transform_indices = @transform_4, window_bounds = array<i64: 512, 128>}, {pipeline_mode = #tpu.pipeline_mode<synchronous>, transform_indices = @transform_5, window_bounds = array<i64: 64, 128>}, {pipeline_mode = #tpu.pipeline_mode<synchronous>, transform_indices = @transform_6, window_bounds = array<i64: 1, 128>}, {transform_indices = @transform_7, window_bounds = array<i64: 8, 128>}]} {
    %c0 = arith.constant 0 : index
    %c0_0 = arith.constant 0 : index
    %0 = vector.load %arg1[%c0, %c0_0] : memref<8x32xf32, #tpu.memory_space<vmem>>, vector<8x32xf32>
    %1 = arith.truncf %0 : vector<8x32xf32> to vector<8x32xbf16>
    %c0_1 = arith.constant 0 : index
    %c0_2 = arith.constant 0 : index
    %2 = vector.load %arg2[%c0_1, %c0_2] : memref<8x32xf32, #tpu.memory_space<vmem>>, vector<8x32xf32>
    %3 = arith.truncf %2 : vector<8x32xf32> to vector<8x32xbf16>
    %c0_3 = arith.constant 0 : index
    %c0_4 = arith.constant 0 : index
    %4 = vector.load %arg3[%c0_3, %c0_4] : memref<32x512xbf16, #tpu.memory_space<vmem>>, vector<32x512xbf16>
    %cst = arith.constant dense<0.000000e+00> : vector<8x512xf32>
    %5 = tpu.matmul %1, %4, %cst {dimension_numbers = #tpu.dot_dimension_numbers<[1], [0], [0], [1], [0, 0, 1, 1], [], []>} : vector<8x32xbf16>, vector<32x512xbf16>, vector<8x512xf32> -> vector<8x512xf32>
    %c0_5 = arith.constant 0 : index
    %c0_6 = arith.constant 0 : index
    %6 = vector.load %arg4[%c0_5, %c0_6] : memref<32x512xbf16, #tpu.memory_space<vmem>>, vector<32x512xbf16>
    %cst_7 = arith.constant dense<0.000000e+00> : vector<8x512xf32>
    %7 = tpu.matmul %3, %6, %cst_7 {dimension_numbers = #tpu.dot_dimension_numbers<[1], [0], [0], [1], [0, 0, 1, 1], [], []>} : vector<8x32xbf16>, vector<32x512xbf16>, vector<8x512xf32> -> vector<8x512xf32>
    %8 = arith.mulf %5, %7 : vector<8x512xf32>
    %9 = arith.truncf %8 : vector<8x512xf32> to vector<8x512xbf16>
    %c0_8 = arith.constant 0 : index
    %c0_9 = arith.constant 0 : index
    %10 = vector.load %arg5[%c0_8, %c0_9] : memref<512x128xbf16, #tpu.memory_space<vmem>>, vector<512x128xbf16>
    %cst_10 = arith.constant dense<0.000000e+00> : vector<8x128xf32>
    %11 = tpu.matmul %9, %10, %cst_10 {dimension_numbers = #tpu.dot_dimension_numbers<[1], [0], [0], [1], [0, 0, 1, 1], [], []>} : vector<8x512xbf16>, vector<512x128xbf16>, vector<8x128xf32> -> vector<8x128xf32>
    %12 = tpu.concatenate %1, %3 in 1 : vector<8x32xbf16>, vector<8x32xbf16> -> vector<8x64xbf16>
    %c0_11 = arith.constant 0 : index
    %c0_12 = arith.constant 0 : index
    %13 = vector.load %arg6[%c0_11, %c0_12] : memref<64x128xbf16, #tpu.memory_space<vmem>>, vector<64x128xbf16>
    %cst_13 = arith.constant dense<0.000000e+00> : vector<8x128xf32>
    %14 = tpu.matmul %12, %13, %cst_13 {dimension_numbers = #tpu.dot_dimension_numbers<[1], [0], [0], [1], [0, 0, 1, 1], [], []>} : vector<8x64xbf16>, vector<64x128xbf16>, vector<8x128xf32> -> vector<8x128xf32>
    %15 = arith.addf %11, %14 : vector<8x128xf32>
    %c0_14 = arith.constant 0 : index
    %c0_15 = arith.constant 0 : index
    %16 = vector.load %arg7[%c0_14, %c0_15] : memref<1x128xf32, #tpu.memory_space<vmem>>, vector<1x128xf32>
    %17 = vector.broadcast %16 : vector<1x128xf32> to vector<8x128xf32>
    %18 = arith.addf %15, %17 : vector<8x128xf32>
    %19 = math.tanh %18 : vector<8x128xf32>
    %c0_16 = arith.constant 0 : index
    %c0_17 = arith.constant 0 : index
    %20 = vector.load %arg8[%c0_16, %c0_17] : memref<8x128xf32, #tpu.memory_space<vmem>>, vector<8x128xf32>
    tpu.vector_store %arg8[%c0_16, %c0_17], %19 {strides = array<i32>} : memref<8x128xf32, #tpu.memory_space<vmem>>, vector<8x128xf32>,
    return
  }
  func.func @transform_0(%arg0: i32) -> (i32, i32) {
    %c0_i32 = arith.constant 0 : i32
    %c0_i32_0 = arith.constant 0 : i32
    return %arg0, %c0_i32 : i32, i32
  }
  func.func @transform_1(%arg0: i32) -> (i32, i32) {
    %c0_i32 = arith.constant 0 : i32
    %c0_i32_0 = arith.constant 0 : i32
    return %arg0, %c0_i32 : i32, i32
  }
  func.func @transform_2(%arg0: i32) -> (i32, i32) {
    %c0_i32 = arith.constant 0 : i32
    %c0_i32_0 = arith.constant 0 : i32
    %c0_i32_1 = arith.constant 0 : i32
    return %c0_i32, %c0_i32_0 : i32, i32
  }
  func.func @transform_3(%arg0: i32) -> (i32, i32) {
    %c0_i32 = arith.constant 0 : i32
    %c0_i32_0 = arith.constant 0 : i32
    %c0_i32_1 = arith.constant 0 : i32
    return %c0_i32, %c0_i32_0 : i32, i32
  }
  func.func @transform_4(%arg0: i32) -> (i32, i32) {
    %c0_i32 = arith.constant 0 : i32
    %c0_i32_0 = arith.constant 0 : i32
    %c0_i32_1 = arith.constant 0 : i32
    return %c0_i32, %c0_i32_0 : i32, i32
  }
  func.func @transform_5(%arg0: i32) -> (i32, i32) {
    %c0_i32 = arith.constant 0 : i32
    %c0_i32_0 = arith.constant 0 : i32
    %c0_i32_1 = arith.constant 0 : i32
    return %c0_i32, %c0_i32_0 : i32, i32
  }
  func.func @transform_6(%arg0: i32) -> (i32, i32) {
    %c0_i32 = arith.constant 0 : i32
    %c0_i32_0 = arith.constant 0 : i32
    %c0_i32_1 = arith.constant 0 : i32
    return %c0_i32, %c0_i32_0 : i32, i32
  }
  func.func @transform_7(%arg0: i32) -> (i32, i32) {
    %c0_i32 = arith.constant 0 : i32
    %c0_i32_0 = arith.constant 0 : i32
    return %arg0, %c0_i32 : i32, i32
  }
}

</mosaic_0001>

<bundles_post_ra>
// kernel: tpu_custom_call.1
= control target key start
LH: loop header
LB: loop body
LE: loop exit
PB: predicated region body
PF: predicated region fallthrough
CT: control target
= control target key end

     0   :  { %12 = vsyncpa [#allocation3], 0  ;;  %s1281_s0 = inlined_call_operand.hbm [shape: f32[8,32], index: 0, kind: input, shape index: {}]   ;;  %s1282_s1 = inlined_call_operand.hbm [shape: f32[8,32], index: 1, kind: input, shape index: {}]   ;;  %s1283_s2 = inlined_call_operand.hbm [shape: bf16[32,512], index: 2, kind: input, shape index: {}]   ;;  %s1284_s3 = inlined_call_operand.hbm [shape: bf16[32,512], index: 3, kind: input, shape index: {}]   ;;  %s1285_s4 = inlined_call_operand.hbm [shape: bf16[512,128], index: 4, kind: input, shape index: {}]   ;;  %s1286_s5 = inlined_call_operand.hbm [shape: bf16[64,128], index: 5, kind: input, shape index: {}]   ;;  %s1287_s6 = inlined_call_operand.vmem [shape: f32[1,128], index: 6, kind: input, shape index: {}]   ;;  %s1288_s7 = inlined_call_operand.hbm [shape: f32[8,128], index: 7, kind: output, shape index: {}]  }
   0x1   :  { %13 = vsyncpa [#allocation6], 0 }
   0x2   :  { %14 = vsyncpa [#allocation9], 0 }
   0x3   :  { %15 = vsyncpa [#allocation12], 0  ;;  %s33_s26 = sshll.u32 %s1282_s1, 4  ;;  %s34_s26 = int_to_ptr.hbm [resolvable:$true] %s33_s26 }
   0x4   :  { %16 = vsyncpa [#allocation4], 0  ;;  %s1189_s27 = smov [#allocation5]   ;;  %s56_s8 = sshll.u32 %s1284_s3, 4  ;;  %s57_s8 = int_to_ptr.hbm [resolvable:$true] %s56_s8 }
   0x5   :  { %s35_s28 = sshll.u32 %s1189_s27, 4  ;;  %s1190_s9 = smov [#allocation8]   ;;  %s36_s28 = int_to_ptr.vmem [resolvable:$true] %s35_s28 }
   0x6   :  { %38 = dma.hbm_to_vmem [thread:$0]  %s34_s26, 128, %s36_s28, [#allocation6]  }
   0x7   :  { %s58_s10 = sshll.u32 %s1190_s9, 4  ;;  %s22_s13 = sshll.u32 %s1281_s0, 4  ;;  %s59_s10 = int_to_ptr.vmem [resolvable:$true] %s58_s10  ;;  %s23_s13 = int_to_ptr.hbm [resolvable:$true] %s22_s13 }
   0x8   :  { %s1191_s1 = smov 256   ;;  %s1192_s14 = smov 16  }
   0x9   :  { %64 = dma.hbm_to_vmem [thread:$0]  %s57_s8, 1024, %s59_s10, [#allocation9], %s1191_s1, %s1191_s1, %s1192_s14  }
   0xa   :  { %s43_s17 = sshll.u32 %s1283_s2, 4  ;;  %s1193_s18 = smov [#allocation2]   ;;  %s44_s17 = int_to_ptr.hbm [resolvable:$true] %s43_s17 }
   0xb   :  { %s24_s19 = sshll.u32 %s1193_s18, 4  ;;  %s1194_s3 = smov [#allocation7]   ;;  %s25_s19 = int_to_ptr.vmem [resolvable:$true] %s24_s19 }
   0xc   :  { %27 = dma.hbm_to_vmem [thread:$0]  %s23_s13, 128, %s25_s19, [#allocation3]  }
   0xd   :  { %s45_s20 = sshll.u32 %s1194_s3, 4  ;;  %s69_s0 = sshll.u32 %s1285_s4, 4  ;;  %s46_s20 = int_to_ptr.vmem [resolvable:$true] %s45_s20  ;;  %s70_s0 = int_to_ptr.hbm [resolvable:$true] %s69_s0 }
   0xe   :  { %51 = dma.hbm_to_vmem [thread:$0]  %s44_s17, 1024, %s46_s20, [#allocation6], %s1191_s1, %s1191_s1, %s1192_s14  }
   0xf   :  { %s1195_s23 = smov [#allocation10]   ;;  %s82_s2 = sshll.u32 %s1286_s5, 4  ;;  %s83_s2 = int_to_ptr.hbm [resolvable:$true] %s82_s2 }
  0x10   :  { %s71_s24 = sshll.u32 %s1195_s23, 4  ;;  %s1196_s27 = smov 64   ;;  %s72_s24 = int_to_ptr.vmem [resolvable:$true] %s71_s24 }
  0x11   :  { %s1197_s28 = smov 4   ;;  %s1198_s29 = smov [#allocation11]  }
  0x12   :  { %77 = dma.hbm_to_vmem [thread:$0]  %s70_s0, 4096, %s72_s24, [#allocation9], %s1196_s27, %s1196_s27, %s1197_s28  }
  0x13   :  { %s84_s30 = sshll.u32 %s1198_s29, 4  ;;  %s85_s30 = int_to_ptr.vmem [resolvable:$true] %s84_s30 }
  0x14   :  { %90 = dma.hbm_to_vmem [thread:$0]  %s83_s2, 512, %s85_s30, [#allocation12], %s1196_s27, %s1196_s27, %s1197_s28  }
  0x15   :  { %1179 = dma.done.wait [#allocation3], 128  }
  0x16   :  { %1180 = vsyncadd [#allocation3], 4294967168 }
  0x17   :  { %1181 = dma.done.wait [#allocation6], 1152  }
  0x18   :  { %1182 = vsyncadd [#allocation6], 4294966144 }
  0x19   :  { %1183 = dma.done.wait [#allocation9], 5120  }
  0x1a   :  { %1184 = vsyncadd [#allocation9], 4294962176 }
  0x1b   :  { %1185 = dma.done.wait [#allocation12], 512  }
  0x1c   :  { %1186 = vsyncadd [#allocation12], 4294966784  ;;  %v745_v0 = vld [vmem:[#allocation7 + $0x20] sm:$0xf]  ;;  %v950_v1 = vld [vmem:[#allocation7 + $0x2c] sm:$0xf0] }
  0x1d   :  { %v948_v2 = vld [vmem:[#allocation7 + $0x24] sm:$0xf]  ;;  %v746_v3 = vor.u32 %v950_v1, %v745_v0  ;;  %v747_v4 = vld [vmem:[#allocation7 + $0x30] sm:$0xf0]  ;;  %v753_v5 = vld [vmem:[#allocation7 + $0x28] sm:$0xf] }
  0x1e   :  { %v951_v6 = vld [vmem:[#allocation7 + $0x34] sm:$0xf0]  ;;  %v750_v7 = vor.u32 %v948_v2, %v747_v4  ;;  %v949_v9 = vld [vmem:[#allocation7 + $0x2c] sm:$0xf]  ;;  %v755_v10 = vld [vmem:[#allocation7 + $0x38] sm:$0xf0] }
  0x1f   :  { %v754_v8 = vor.u32 %v951_v6, %v753_v5  ;;  %v729_v11 = vld [vmem:[#allocation7] sm:$0xf]  ;;  %180 = vmatpush.bf16.msra.mxu0 %v746_v3  ;;  %v758_v12 = vor.u32 %v949_v9, %v755_v10  ;;  %v946_v13 = vld [vmem:[#allocation7 + $0xc] sm:$0xf0]  ;;  %v944_v14 = vld [vmem:[#allocation7 + $0x4] sm:$0xf] }
  0x20   :  { %v731_v15 = vld [vmem:[#allocation7 + $0x10] sm:$0xf0]  ;;  %193 = vmatpush.bf16.msra.mxu1 %v750_v7  ;;  %v730_v16 = vor.u32 %v946_v13, %v729_v11  ;;  %v737_v18 = vld [vmem:[#allocation7 + $0x8] sm:$0xf]  ;;  %v947_v19 = vld [vmem:[#allocation7 + $0x14] sm:$0xf0] }
  0x21   :  { %206 = vmatpush.bf16.msra.mxu2 %v754_v8  ;;  %v734_v17 = vor.u32 %v944_v14, %v731_v15  ;;  %v945_v20 = vld [vmem:[#allocation7 + $0xc] sm:$0xf]  ;;  %219 = vmatpush.bf16.msra.mxu3 %v758_v12  ;;  %v738_v21 = vor.u32 %v947_v19, %v737_v18  ;;  %v739_v22 = vld [vmem:[#allocation7 + $0x18] sm:$0xf0]  ;;  %v118_v23 = vld [vmem:[#allocation2] sm:$0xff]  ;;  %vm170_vm0 = vcmask 261120  }
  0x22   :  { %v789_v24 = vld [vmem:[#allocation8 + $0x28] sm:$0xf]  ;;  %v742_v25 = vor.u32 %v945_v20, %v739_v22  ;;  %v1259_v26 = vpack.c.bf16 %v118_v23, %v118_v23  ;;  %v959_v27 = vld [vmem:[#allocation8 + $0x34] sm:$0xf0]  ;;  %v956_v28 = vld [vmem:[#allocation8 + $0x24] sm:$0xf] }
  0x23   :  { %v783_v29 = vld [vmem:[#allocation8 + $0x30] sm:$0xf0]  ;;  %181 = vmatpush.bf16.msra.mxu0 %v730_v16  ;;  %v790_v30 = vor.u32 %v959_v27, %v789_v24  ;;  %v781_v32 = vld [vmem:[#allocation8 + $0x20] sm:$0xf]  ;;  %v958_v33 = vld [vmem:[#allocation8 + $0x2c] sm:$0xf0] }
  0x24   :  { %v786_v31 = vor.u32 %v956_v28, %v783_v29  ;;  %v773_v34 = vld [vmem:[#allocation8 + $0x8] sm:$0xf]  ;;  %194 = vmatpush.bf16.msra.mxu1 %v734_v17  ;;  %v782_v35 = vor.u32 %v958_v33, %v781_v32  ;;  %v955_v36 = vld [vmem:[#allocation8 + $0x14] sm:$0xf0]  ;;  %v957_v37 = vld [vmem:[#allocation8 + $0x2c] sm:$0xf] }
  0x25   :  { %207 = vmatpush.bf16.msra.mxu2 %v738_v21  ;;  %v791_v38 = vld [vmem:[#allocation8 + $0x38] sm:$0xf0]  ;;  %220 = vmatpush.bf16.msra.mxu3 %v742_v25  ;;  %v774_v39 = vor.u32 %v955_v36, %v773_v34  ;;  %v952_v41 = vld [vmem:[#allocation8 + $0x4] sm:$0xf]  ;;  %v767_v42 = vld [vmem:[#allocation8 + $0x10] sm:$0xf0] }
  0x26   :  { %v794_v40 = vor.u32 %v957_v37, %v791_v38  ;;  %v765_v43 = vld [vmem:[#allocation8] sm:$0xf]  ;;  %759 = vmatmul.msk.bf16.vlgmr.msra.gmra.mxu0 %vm170_vm0, %v1259_v26  ;;  %v770_v44 = vor.u32 %v952_v41, %v767_v42  ;;  %v954_v45 = vld [vmem:[#allocation8 + $0xc] sm:$0xf0]  ;;  %v953_v46 = vld [vmem:[#allocation8 + $0xc] sm:$0xf] }
  0x27   :  { %v775_v47 = vld [vmem:[#allocation8 + $0x18] sm:$0xf0]  ;;  %760 = vmatmul.msk.bf16.vlgmr.msra.gmra.mxu1 %vm170_vm0, %v1259_v26  ;;  %283 = vmatpush.bf16.msrb.mxu0 %v782_v35  ;;  %v766_v49 = vor.u32 %v954_v45, %v765_v43  ;;  %v974_v56 = vld [vmem:[#allocation10 + $0x70] sm:$0xff]  ;;  %s1199_s4 = smov 32   ;;  %v973_v61 = vld [vmem:[#allocation10 + $0x68] sm:$0xff]  ;;  %vm440_vm1 = vcmask 523264  }
  0x28   :  { %296 = vmatpush.bf16.msrb.mxu1 %v786_v31  ;;  %761 = vmatmul.msk.bf16.vlgmr.msra.gmra.mxu2 %vm170_vm0, %v1259_v26  ;;  %v120_v48 = vld [vmem:[#allocation5] sm:$0xff]  ;;  %v778_v53 = vor.u32 %v953_v46, %v775_v47  ;;  %v966_v57 = vld [vmem:[#allocation10 + $0x30] sm:$0xff]  ;;  %v965_v62 = vld [vmem:[#allocation10 + $0x28] sm:$0xff]  ;;  %s1200_s9 = smov [#allocation13]   ;;  %s714_s13 = sshll.u32 %s1288_s7, 4  ;;  %s715_s13 = int_to_ptr.hbm [resolvable:$true] %s714_s13 }
  0x29   :  { %309 = vmatpush.bf16.msrb.mxu2 %v790_v30  ;;  %762 = vmatmul.msk.bf16.vlgmr.msra.gmra.mxu3 %vm170_vm0, %v1259_v26  ;;  %v121_v50 = vpack.c.bf16 %v120_v48, %v120_v48  ;;  %v967_v51 = vld [vmem:[#allocation10 + $0x38] sm:$0xff]  ;;  %v994_v60 = vld [vmem:[#allocation11 + $0x10] sm:$0xff]  ;;  %v993_v63 = vld [vmem:[#allocation11 + $0x8] sm:$0xff]  ;;  %s712_s10 = sshll.u32 %s1200_s9, 4  ;;  %s713_s10 = int_to_ptr.vmem [resolvable:$true] %s712_s10 }
  0x2a   :  { %v975_v52 = vld [vmem:[#allocation10 + $0x78] sm:$0xff]  ;;  %322 = vmatpush.bf16.msrb.mxu3 %v794_v40  ;;  %v992_v0 = vld [vmem:[#allocation11] sm:$0xff]  ;;  %v982_v2 = vld [vmem:[#allocation10 + $0xb0] sm:$0xff] }
  0x2b   :  { %v995_v54 = vld [vmem:[#allocation11 + $0x18] sm:$0xff]  ;;  %v402_v55 = vunpack.c.l.b16 %v121_v50  ;;  %284 = vmatpush.bf16.msrb.mxu0 %v766_v49  ;;  %v990_v3 = vld [vmem:[#allocation10 + $0xf0] sm:$0xff]  ;;  %v964_v4 = vld [vmem:[#allocation10 + $0x20] sm:$0xff] }
  0x2c   :  { %297 = vmatpush.bf16.msrb.mxu1 %v770_v44  ;;  %v983_v58 = vld [vmem:[#allocation10 + $0xb8] sm:$0xff]  ;;  %v972_v5 = vld [vmem:[#allocation10 + $0x60] sm:$0xff]  ;;  %v981_v6 = vld [vmem:[#allocation10 + $0xa8] sm:$0xff] }
  0x2d   :  { %310 = vmatpush.bf16.msrb.mxu2 %v774_v39  ;;  %v403_v59 = vpack.c.b16 %v402_v55, %v402_v55  ;;  %v991_v1 = vld [vmem:[#allocation10 + $0xf8] sm:$0xff]  ;;  %v989_v7 = vld [vmem:[#allocation10 + $0xe8] sm:$0xff]  ;;  %v980_v10 = vld [vmem:[#allocation10 + $0xa0] sm:$0xff] }
  0x2e   :  { %323 = vmatpush.bf16.msrb.mxu3 %v778_v53  ;;  %v963_v8 = vld [vmem:[#allocation10 + $0x18] sm:$0xff]  ;;  %v988_v11 = vld [vmem:[#allocation10 + $0xe0] sm:$0xff]  ;;  %v962_v12 = vld [vmem:[#allocation10 + $0x10] sm:$0xff] }
  0x2f   :  { %447 = vmatpush.bf16.msra.mxu0 %v995_v54  ;;  %404 = vrot.lane.b32.xlu0 %v403_v59, %s1199_s4  ;;  %v971_v9 = vld [vmem:[#allocation10 + $0x58] sm:$0xff]  ;;  %v970_v13 = vld [vmem:[#allocation10 + $0x50] sm:$0xff]  ;;  %v961_v16 = vld [vmem:[#allocation10 + $0x8] sm:$0xff] }
  0x30   :  { %648 = vmatpush.bf16.msra.mxu1 %v967_v51  ;;  %v979_v14 = vld [vmem:[#allocation10 + $0x98] sm:$0xff]  ;;  %v969_v17 = vld [vmem:[#allocation10 + $0x48] sm:$0xff]  ;;  %v978_v18 = vld [vmem:[#allocation10 + $0x90] sm:$0xff] }
  0x31   :  { %661 = vmatpush.bf16.msra.mxu2 %v975_v52  ;;  %v987_v15 = vld [vmem:[#allocation10 + $0xd8] sm:$0xff]  ;;  %v986_v19 = vld [vmem:[#allocation10 + $0xd0] sm:$0xff]  ;;  %v960_v20 = vld [vmem:[#allocation10] sm:$0xff] }
  0x32   :  { %674 = vmatpush.bf16.msra.mxu3 %v983_v58  ;;  %v968_v21 = vld [vmem:[#allocation10 + $0x40] sm:$0xff]  ;;  %v977_v22 = vld [vmem:[#allocation10 + $0x88] sm:$0xff] }
  0x33   :  { %448 = vmatpush.bf16.msra.mxu0 %v994_v60  ;;  %v985_v23 = vld [vmem:[#allocation10 + $0xc8] sm:$0xff]  ;;  %v976_v24 = vld [vmem:[#allocation10 + $0x80] sm:$0xff] }
  0x34   :  { %649 = vmatpush.bf16.msra.mxu1 %v966_v57  ;;  %v984_v25 = vld [vmem:[#allocation10 + $0xc0] sm:$0xff] }
  0x35   :  { %662 = vmatpush.bf16.msra.mxu2 %v974_v56 }
  0x36   :  { %795 = vmatmul.msk.bf16.vlgmr.msrb.gmra.mxu0 %vm170_vm0, %v121_v50  ;;  %675 = vmatpush.bf16.msra.mxu3 %v982_v2 }
  0x37   :  { %449 = vmatpush.bf16.msra.mxu0 %v993_v63  ;;  %796 = vmatmul.msk.bf16.vlgmr.msrb.gmra.mxu1 %vm170_vm0, %v121_v50 }
  0x38   :  { %650 = vmatpush.bf16.msra.mxu1 %v965_v62  ;;  %797 = vmatmul.msk.bf16.vlgmr.msrb.gmra.mxu2 %vm170_vm0, %v121_v50  ;;  %v1008_v62 = vld [vmem:[%s1287_s6] ss:$0 sm:$0xff] }
  0x39   :  { %663 = vmatpush.bf16.msra.mxu2 %v973_v61  ;;  %798 = vmatmul.msk.bf16.vlgmr.msrb.gmra.mxu3 %vm170_vm0, %v121_v50 }
  0x3a   :  { %676 = vmatpush.bf16.msra.mxu3 %v981_v6 }
  0x3b   :  { %450 = vmatpush.bf16.msra.mxu0 %v992_v0 }
  0x3c   :  { %651 = vmatpush.bf16.msra.mxu1 %v964_v4 }
  0x3d   :  { %664 = vmatpush.bf16.msra.mxu2 %v972_v5 }
  0x3e   :  { %677 = vmatpush.bf16.msra.mxu3 %v980_v10 }
  0x3f   :  { %687 = vmatpush.bf16.msrb.mxu0 %v991_v1 }
  0x40   :  { %652 = vmatpush.bf16.msra.mxu1 %v963_v8 }
  0x41   :  { %665 = vmatpush.bf16.msra.mxu2 %v971_v9 }
  0x42   :  { %678 = vmatpush.bf16.msra.mxu3 %v979_v14 }
  0x43   :  { %688 = vmatpush.bf16.msrb.mxu0 %v990_v3 }
  0x44   :  { %653 = vmatpush.bf16.msra.mxu1 %v962_v12 }
  0x45   :  { %666 = vmatpush.bf16.msra.mxu2 %v970_v13 }
  0x46   :  { %679 = vmatpush.bf16.msra.mxu3 %v978_v18 }
  0x47   :  { %689 = vmatpush.bf16.msrb.mxu0 %v989_v7 }
  0x48   :  { %654 = vmatpush.bf16.msra.mxu1 %v961_v16 }
  0x49   :  { %667 = vmatpush.bf16.msra.mxu2 %v969_v17 }
  0x4a   :  { %680 = vmatpush.bf16.msra.mxu3 %v977_v22 }
  0x4b   :  { %690 = vmatpush.bf16.msrb.mxu0 %v988_v11 }
  0x4c   :  { %655 = vmatpush.bf16.msra.mxu1 %v960_v20 }
  0x4d   :  { %668 = vmatpush.bf16.msra.mxu2 %v968_v21 }
  0x4e   :  { %681 = vmatpush.bf16.msra.mxu3 %v976_v24 }
  0x4f   :  { %691 = vmatpush.bf16.msrb.mxu0 %v987_v15 }
  0x53   :  { %692 = vmatpush.bf16.msrb.mxu0 %v986_v19 }
  0x57   :  { %693 = vmatpush.bf16.msrb.mxu0 %v985_v23 }
  0x5b   :  { %694 = vmatpush.bf16.msrb.mxu0 %v984_v25 }
  0xa1   :  { %v405_v27 = vpop.permute.xlu0 %404 }
  0xa2   :  { %v407_v28 = vsel %vm170_vm0, %v1259_v26, %v405_v27 }
  0xa3   :  { %815 = vmatmul.msk.bf16.vlgmr.msra.gmra.mxu0 %vm440_vm1, %v407_v28  ;;  %v183_v29 = vpop.f32.mrf.mxu0 }
  0xa4   :  { %v196_v30 = vpop.f32.mrf.mxu1 }
  0xab   :  { %v209_v31 = vpop.f32.mrf.mxu2  ;;  %v185_v33 = vpop.f32.mrf.mxu0 }
  0xac   :  { %v222_v32 = vpop.f32.mrf.mxu3  ;;  %v198_v34 = vpop.f32.mrf.mxu1 }
  0xb3   :  { %v211_v35 = vpop.f32.mrf.mxu2  ;;  %v286_v37 = vpop.f32.mrf.mxu0 }
  0xb4   :  { %v224_v36 = vpop.f32.mrf.mxu3  ;;  %v329_v38 = vmul.f32 %v286_v37, %v183_v29  ;;  %v299_v39 = vpop.f32.mrf.mxu1 }
  0xb5   :  { %v330_v40 = vmul.f32 %v299_v39, %v196_v30 }
  0xb6   :  { %v333_v41 = vpack.c.bf16 %v329_v38, %v329_v38 }
  0xb7   :  { %v334_v42 = vpack.c.bf16 %v330_v40, %v330_v40 }
  0xb8   :  { %656 = vmatmul.bf16.vlgmr.msra.gmra.mxu1 %v333_v41 }
  0xb9   :  { %669 = vmatmul.bf16.vlgmr.msra.gmra.mxu2 %v334_v42 }
  0xbb   :  { %v312_v43 = vpop.f32.mrf.mxu2  ;;  %v288_v45 = vpop.f32.mrf.mxu0 }
  0xbc   :  { %v331_v44 = vmul.f32 %v312_v43, %v209_v31  ;;  %v325_v26 = vpop.f32.mrf.mxu3  ;;  %v301_v47 = vpop.f32.mrf.mxu1 }
  0xbd   :  { %v332_v46 = vmul.f32 %v325_v26, %v222_v32 }
  0xbe   :  { %v335_v48 = vpack.c.bf16 %v331_v44, %v331_v44 }
  0xbf   :  { %v336_v49 = vpack.c.bf16 %v332_v46, %v332_v46 }
  0xc0   :  { %682 = vmatmul.bf16.vlgmr.msra.gmra.mxu3 %v335_v48 }
  0xc1   :  { %695 = vmatmul.bf16.vlgmr.msrb.gmra.mxu0 %v336_v49 }
  0xc3   :  { %v314_v50 = vpop.f32.mrf.mxu2 }
  0xc4   :  { %v327_v51 = vpop.f32.mrf.mxu3 }
 0x120   :  { %v452_v52 = vpop.f32.mrf.mxu0 }
 0x128   :  { %v454_v53 = vpop.f32.mrf.mxu0 }
 0x135   :  { %v657_v54 = vpop.f32.mrf.mxu1 }
 0x136   :  { %v658_v58 = vadd.f32 %v657_v54, %v452_v52 }
 0x13c   :  { %v670_v55 = vpop.f32.mrf.mxu2 }
 0x13d   :  { %v659_v57 = vpop.f32.mrf.mxu1  ;;  %v671_v59 = vadd.f32 %v670_v55, %v658_v58 }
 0x13e   :  { %v696_v56 = vpop.f32.mrf.mxu0 }
 0x143   :  { %v683_v60 = vpop.f32.mrf.mxu3 }
 0x144   :  { %v684_v61 = vadd.f32 %v683_v60, %v671_v59  ;;  %v672_v63 = vpop.f32.mrf.mxu2 }
 0x146   :  { %v697_v0 = vadd.f32 %v696_v56, %v684_v61  ;;  %v698_v1 = vpop.f32.mrf.mxu0 }
 0x148   :  { %v704_v2 = vadd.f32 %v1008_v62, %v697_v0 }
 0x14a   :  { %1009 = vtanh.f32 %v704_v2 }
 0x14b   :  { %v685_v3 = vpop.f32.mrf.mxu3 }
 0x150   :  { %v1010_v4 = vpop.eup %1009 }
 0x151   :  { %706 = vst [vmem:[#allocation13] sm:$0xff] %v1010_v4 }
 0x152   :  { %717 = dma.vmem_to_hbm [thread:$0]  %s713_s10, 128, %s715_s13, [#allocation4]  }
 0x153   :  { %1187 = dma.done.wait [#allocation4], 128  }
 0x154   :  { %1188 = vsyncadd [#allocation4], 4294967168 }
 0x155   :  { %722 = vsyncpa [#allocation3], 1 }
 0x156   :  { %723 = vsyncpa [#allocation6], 1 }
 0x157   :  { %724 = vsyncpa [#allocation9], 1 }
 0x158   :  { %725 = vsyncpa [#allocation12], 1 }
 0x159   :  { %726 = vsyncpa [#allocation4], 1 }

</bundles_post_ra>
